<compile_context>
chip_gen: v5e
topology: v5e:2x2
jax: 0.10.0
libtpu: 0.0.40
codegen_flags: <defaults>
</compile_context>

<pallas_src>
import jax
import jax.numpy as jnp
from jax import lax
from jax.experimental import pallas as pl
from jax.experimental.pallas import tpu as pltpu


def _round_up(x, m):
    return ((x + m - 1) // m) * m


def mlp_kernel(x_ref, w1_ref, b1_ref, w2_ref, b2_ref, w3_ref, b3_ref, o_ref):
    # x_ref: (tile_b, D) tile of the batch (original dtype).  Work in the transposed
    # orientation so the batch dimension maps to lanes (lane-dense activations/stores).
    xb = x_ref[...].astype(jnp.bfloat16)                    # bf16 MXU operand

    # Layer 1: h1 = relu(W1 @ x^T + b1)   -> (H1, tile_b), f32 accumulation.
    h1 = lax.dot_general(
        w1_ref[...], xb,
        (((1,), (1,)), ((), ())),                            # contract D with D
        preferred_element_type=jnp.float32)
    h1 = jnp.maximum(h1 + b1_ref[...], 0.0)
    # Dropout: identity (eval mode).

    # Layer 2: h2 = relu(W2 @ h1 + b2)    -> (H2, tile_b), bf16 operands, f32 acc.
    h2 = jnp.dot(w2_ref[...], h1.astype(jnp.bfloat16),
                 preferred_element_type=jnp.float32)
    h2 = jnp.maximum(h2 + b2_ref[...], 0.0)
    # Dropout: identity (eval mode).

    # Output layer: logits = w3 . h2 + b3 -> (1, tile_b); sublane reduction (XLU),
    # b3 read as an SMEM scalar.
    logits = jnp.sum(h2 * w3_ref[...], axis=0, keepdims=True) + b3_ref[0, 0]
    o_ref[...] = logits.astype(o_ref.dtype)


def mlp_classifier_forward(x, params, *, max_tile_b=32768):
    """x: (B, input_dim) float32.  Returns (B, 1) float32 logits (eval-mode forward)."""
    w1, b1, w2, b2, w3, b3 = params
    B, D = x.shape
    H1 = w1.shape[0]
    H2 = w2.shape[0]

    # ---- generation-aware VMEM budget -------------------------------------------
    try:
        vmem_phys = int(getattr(pltpu.get_tpu_info(), "vmem_capacity_bytes", 64 << 20))
    except Exception:  # pragma: no cover - fall back to the smallest (v7x per-TC) VMEM
        vmem_phys = 64 << 20

    d_pad = _round_up(max(D, 128), 128)                       # 128-lane padding of D
    h1_pad = _round_up(max(H1, 128), 128)
    x_item = jnp.dtype(x.dtype).itemsize
    # Per-batch-row VMEM cost (bytes), lane padding and in-kernel temporaries included.
    per_row = (2 * d_pad * x_item        # x tile, double-buffered
               + d_pad * 2               # in-kernel bf16 copy of the x tile
               + H1 * (4 + 2)            # h1 f32 + bf16 copy for layer 2
               + H2 * 4                  # h2 f32
               + 2 * 8 * 4)              # (1, tile_b) out tile (8-sublane pad), dbl-buffered
    resident = (H1 * d_pad * 2 + H2 * h1_pad * 2              # bf16 W1, W2 (lane padded)
                + (H1 + H2 + H2 + 8) * 128 * 4)               # b1, b2, w3 columns (f32)

    budget = max(per_row * 128, vmem_phys // 2 - resident)    # ~50% of physical VMEM
    tb = budget // per_row
    tb = max(128, (tb // 128) * 128)
    tb = min(tb, int(max_tile_b))
    if B >= 4 * 128:                                          # keep >=~4 steps -> megacore
        tb = min(tb, max(128, _round_up(pl.cdiv(B, 4), 128)))
    tb = min(tb, _round_up(B, 128))                           # don't over-pad tiny batches
    tile_b = tb

    grid = (pl.cdiv(B, tile_b),)          # ragged tail handled by partial edge block
    B_out = grid[0] * tile_b              # output padded to whole blocks (cheap; sliced off)

    # One-time, tiny weight casts (bf16 MXU operands); biases / w3 stay f32.
    w1b = w1.astype(jnp.bfloat16)
    w2b = w2.astype(jnp.bfloat16)

    const2 = lambda i: (0, 0)             # weights/biases: VMEM-resident, never re-DMA'd
    vmem_limit = int(min(vmem_phys,
                         max(resident + per_row * tile_b + (16 << 20), 32 << 20)))

    out_t = pl.pallas_call(
        mlp_kernel,
        out_shape=jax.ShapeDtypeStruct((1, B_out), jnp.float32),
        grid_spec=pltpu.PrefetchScalarGridSpec(
            num_scalar_prefetch=0,
            grid=grid,
            in_specs=[
                pl.BlockSpec((tile_b, D), lambda i: (i, 0)),   # x tile (streamed, raw dtype)
                pl.BlockSpec((H1, D), const2),                 # W1 (bf16)
                pl.BlockSpec((H1, 1), const2),                 # b1 (f32 column)
                pl.BlockSpec((H2, H1), const2),                # W2 (bf16)
                pl.BlockSpec((H2, 1), const2),                 # b2 (f32 column)
                pl.BlockSpec((H2, 1), const2),                 # w3 (f32 column)
                pl.BlockSpec(memory_space=pltpu.MemorySpace.SMEM),  # b3 scalar
            ],
            out_specs=pl.BlockSpec((1, tile_b), lambda i: (0, i)),  # lane-dense logits
        ),
        compiler_params=pltpu.CompilerParams(
            dimension_semantics=("parallel",),
            vmem_limit_bytes=vmem_limit,
        ),
    )(x, w1b, b1, w2b, b2, w3, b3)

    # (1, B_out) -> (B, 1): drop batch padding, restore the PyTorch output layout.
    return out_t[0, :B][:, None]


def init_params(key, input_dim, hidden_dims=(64, 32)):
    """nn.Linear-style init U(-1/sqrt(fan_in), +1/sqrt(fan_in)).

    Layout (kernel-consumed, equivalent to the torch parameters):
      w1 (H1, D), b1 (H1, 1), w2 (H2, H1), b2 (H2, 1), w3 (H2, 1), b3 (1, 1).
    """
    H1, H2 = hidden_dims

    def linear(k, fan_in, fan_out):
        kw, kb = jax.random.split(k)
        bound = float(fan_in) ** -0.5
        w = jax.random.uniform(kw, (fan_out, fan_in), jnp.float32, -bound, bound)
        b = jax.random.uniform(kb, (fan_out, 1), jnp.float32, -bound, bound)
        return w, b

    k1, k2, k3 = jax.random.split(key, 3)
    w1, b1 = linear(k1, input_dim, H1)
    w2, b2 = linear(k2, H1, H2)
    w3t, b3 = linear(k3, H2, 1)               # torch weight shape (1, H2)
    return (w1, b1, w2, b2, w3t.T, b3)        # store w3 as an (H2, 1) column


if __name__ == "__main__":
    key = jax.random.PRNGKey(0)
    B, INPUT_DIM = 200, 16                    # small latent-feature input, ragged batch
    HIDDEN_DIMS = (64, 32)

    key, kx = jax.random.split(key)
    x = jax.random.normal(kx, (B, INPUT_DIM), jnp.float32)
    params = init_params(key, INPUT_DIM, HIDDEN_DIMS)

    out = mlp_classifier_forward(x, params)
    out = jax.block_until_ready(out)
    assert out.shape == (B, 1)

    # Reference: same eval-mode forward in plain JAX with the same bf16 operand rounding.
    w1, b1, w2, b2, w3, b3 = params
    hp = jax.lax.Precision.HIGHEST
    f32 = jnp.float32
    xq = x.astype(jnp.bfloat16).astype(f32)
    w1q = w1.astype(jnp.bfloat16).astype(f32)
    w2q = w2.astype(jnp.bfloat16).astype(f32)
    h1 = jnp.maximum(jnp.dot(xq, w1q.T, precision=hp) + b1.T, 0.0)
    h1 = h1.astype(jnp.bfloat16).astype(f32)
    h2 = jnp.maximum(jnp.dot(h1, w2q.T, precision=hp) + b2.T, 0.0)
    ref = jnp.dot(h2, w3, precision=hp) + b3[0, 0]

    assert jnp.allclose(out, ref, atol=2e-3, rtol=2e-3), float(
        jnp.max(jnp.abs(out - ref)))

    print("KERNEL_OK")
</pallas_src>

<mosaic_0001>
module attributes {stable_mosaic.version = 11 : i64} {
  func.func @mlp_kernel(%arg0: i32, %arg1: memref<256x16xf32, #tpu.memory_space<vmem>>, %arg2: memref<64x16xbf16, #tpu.memory_space<vmem>>, %arg3: memref<64x1xf32, #tpu.memory_space<vmem>>, %arg4: memref<32x64xbf16, #tpu.memory_space<vmem>>, %arg5: memref<32x1xf32, #tpu.memory_space<vmem>>, %arg6: memref<32x1xf32, #tpu.memory_space<vmem>>, %arg7: memref<1x1xf32, #tpu.memory_space<smem>>, %arg8: memref<1x256xf32, #tpu.memory_space<vmem>>) attributes {dimension_semantics = [#tpu.dimension_semantics<parallel>], iteration_bounds = array<i64: 1>, scalar_prefetch = 0 : i64, scratch_operands = 0 : i64, tpu.core_type = #tpu.core_type<tc>, window_params = [{transform_indices = @transform_0, window_bounds = array<i64: 256, 16>}, {pipeline_mode = #tpu.pipeline_mode<synchronous>, transform_indices = @transform_1, window_bounds = array<i64: 64, 16>}, {pipeline_mode = #tpu.pipeline_mode<synchronous>, transform_indices = @transform_2, window_bounds = array<i64: 64, 1>}, {pipeline_mode = #tpu.pipeline_mode<synchronous>, transform_indices = @transform_3, window_bounds = array<i64: 32, 64>}, {pipeline_mode = #tpu.pipeline_mode<synchronous>, transform_indices = @transform_4, window_bounds = array<i64: 32, 1>}, {pipeline_mode = #tpu.pipeline_mode<synchronous>, transform_indices = @transform_5, window_bounds = array<i64: 32, 1>}, {transform_indices = @transform_6, window_bounds = array<i64: 1, 1>}, {transform_indices = @transform_7, window_bounds = array<i64: 1, 256>}]} {
    %c0 = arith.constant 0 : index
    %c0_0 = arith.constant 0 : index
    %0 = vector.load %arg1[%c0, %c0_0] : memref<256x16xf32, #tpu.memory_space<vmem>>, vector<256x16xf32>
    %1 = arith.truncf %0 : vector<256x16xf32> to vector<256x16xbf16>
    %c0_1 = arith.constant 0 : index
    %c0_2 = arith.constant 0 : index
    %2 = vector.load %arg2[%c0_1, %c0_2] : memref<64x16xbf16, #tpu.memory_space<vmem>>, vector<64x16xbf16>
    %cst = arith.constant dense<0.000000e+00> : vector<64x256xf32>
    %3 = tpu.matmul %2, %1, %cst {dimension_numbers = #tpu.dot_dimension_numbers<[1], [1], [0], [0], [0, 0, 1, 0], [], []>} : vector<64x16xbf16>, vector<256x16xbf16>, vector<64x256xf32> -> vector<64x256xf32>
    %c0_3 = arith.constant 0 : index
    %c0_4 = arith.constant 0 : index
    %4 = vector.load %arg3[%c0_3, %c0_4] : memref<64x1xf32, #tpu.memory_space<vmem>>, vector<64x1xf32>
    %5 = vector.broadcast %4 : vector<64x1xf32> to vector<64x256xf32>
    %6 = arith.addf %3, %5 : vector<64x256xf32>
    %cst_5 = arith.constant 0.000000e+00 : f32
    %7 = vector.broadcast %cst_5 : f32 to vector<64x256xf32>
    %8 = arith.maximumf %6, %7 : vector<64x256xf32>
    %c0_6 = arith.constant 0 : index
    %c0_7 = arith.constant 0 : index
    %9 = vector.load %arg4[%c0_6, %c0_7] : memref<32x64xbf16, #tpu.memory_space<vmem>>, vector<32x64xbf16>
    %10 = arith.truncf %8 : vector<64x256xf32> to vector<64x256xbf16>
    %cst_8 = arith.constant dense<0.000000e+00> : vector<32x256xf32>
    %11 = tpu.matmul %9, %10, %cst_8 {dimension_numbers = #tpu.dot_dimension_numbers<[1], [0], [0], [1], [0, 0, 1, 1], [], []>} : vector<32x64xbf16>, vector<64x256xbf16>, vector<32x256xf32> -> vector<32x256xf32>
    %c0_9 = arith.constant 0 : index
    %c0_10 = arith.constant 0 : index
    %12 = vector.load %arg5[%c0_9, %c0_10] : memref<32x1xf32, #tpu.memory_space<vmem>>, vector<32x1xf32>
    %13 = vector.broadcast %12 : vector<32x1xf32> to vector<32x256xf32>
    %14 = arith.addf %11, %13 : vector<32x256xf32>
    %cst_11 = arith.constant 0.000000e+00 : f32
    %15 = vector.broadcast %cst_11 : f32 to vector<32x256xf32>
    %16 = arith.maximumf %14, %15 : vector<32x256xf32>
    %c0_12 = arith.constant 0 : index
    %c0_13 = arith.constant 0 : index
    %17 = vector.load %arg6[%c0_12, %c0_13] : memref<32x1xf32, #tpu.memory_space<vmem>>, vector<32x1xf32>
    %18 = vector.broadcast %17 : vector<32x1xf32> to vector<32x256xf32>
    %19 = arith.mulf %16, %18 : vector<32x256xf32>
    %cst_14 = arith.constant dense<0.000000e+00> : vector<256xf32>
    %20 = vector.multi_reduction <add>, %19, %cst_14 [0] : vector<32x256xf32> to vector<256xf32>
    %21 = vector.shape_cast %20 : vector<256xf32> to vector<1x256xf32>
    %c0_15 = arith.constant 0 : index
    %c0_16 = arith.constant 0 : index
    %22 = memref.load %arg7[%c0_15, %c0_16] : memref<1x1xf32, #tpu.memory_space<smem>>
    %23 = vector.broadcast %22 : f32 to vector<1x256xf32>
    %24 = arith.addf %21, %23 : vector<1x256xf32>
    %c0_17 = arith.constant 0 : index
    %c0_18 = arith.constant 0 : index
    %25 = vector.load %arg8[%c0_17, %c0_18] : memref<1x256xf32, #tpu.memory_space<vmem>>, vector<1x256xf32>
    tpu.vector_store %arg8[%c0_17, %c0_18], %24 {strides = array<i32>} : memref<1x256xf32, #tpu.memory_space<vmem>>, vector<1x256xf32>,
    return
  }
  func.func @transform_0(%arg0: i32) -> (i32, i32) {
    %c0_i32 = arith.constant 0 : i32
    %c0_i32_0 = arith.constant 0 : i32
    return %arg0, %c0_i32 : i32, i32
  }
  func.func @transform_1(%arg0: i32) -> (i32, i32) {
    %c0_i32 = arith.constant 0 : i32
    %c0_i32_0 = arith.constant 0 : i32
    %c0_i32_1 = arith.constant 0 : i32
    return %c0_i32, %c0_i32_0 : i32, i32
  }
  func.func @transform_2(%arg0: i32) -> (i32, i32) {
    %c0_i32 = arith.constant 0 : i32
    %c0_i32_0 = arith.constant 0 : i32
    %c0_i32_1 = arith.constant 0 : i32
    return %c0_i32, %c0_i32_0 : i32, i32
  }
  func.func @transform_3(%arg0: i32) -> (i32, i32) {
    %c0_i32 = arith.constant 0 : i32
    %c0_i32_0 = arith.constant 0 : i32
    %c0_i32_1 = arith.constant 0 : i32
    return %c0_i32, %c0_i32_0 : i32, i32
  }
  func.func @transform_4(%arg0: i32) -> (i32, i32) {
    %c0_i32 = arith.constant 0 : i32
    %c0_i32_0 = arith.constant 0 : i32
    %c0_i32_1 = arith.constant 0 : i32
    return %c0_i32, %c0_i32_0 : i32, i32
  }
  func.func @transform_5(%arg0: i32) -> (i32, i32) {
    %c0_i32 = arith.constant 0 : i32
    %c0_i32_0 = arith.constant 0 : i32
    %c0_i32_1 = arith.constant 0 : i32
    return %c0_i32, %c0_i32_0 : i32, i32
  }
  func.func @transform_6(%arg0: i32) -> (i32, i32) {
    %c0_i32 = arith.constant 0 : i32
    %c0_i32_0 = arith.constant 0 : i32
    %c0_i32_1 = arith.constant 0 : i32
    return %c0_i32, %c0_i32_0 : i32, i32
  }
  func.func @transform_7(%arg0: i32) -> (i32, i32) {
    %c0_i32 = arith.constant 0 : i32
    %c0_i32_0 = arith.constant 0 : i32
    return %c0_i32, %arg0 : i32, i32
  }
}

</mosaic_0001>

<bundles_post_ra>
// kernel: tpu_custom_call.1
= control target key start
LH: loop header
LB: loop body
LE: loop exit
PB: predicated region body
PF: predicated region fallthrough
CT: control target
= control target key end

     0   :  { %vm153_vm0 = vcmask 130048   ;;  %s791_s0 = inlined_call_operand.vmem [shape: f32[200,16], index: 0, kind: input, shape index: {}]   ;;  %s792_s1 = inlined_call_operand.vmem [shape: bf16[64,16], index: 1, kind: input, shape index: {}]   ;;  %s793_s2 = inlined_call_operand.vmem [shape: f32[64,1], index: 2, kind: input, shape index: {}]   ;;  %s794_s3 = inlined_call_operand.vmem [shape: bf16[32,64], index: 3, kind: input, shape index: {}]   ;;  %s795_s4 = inlined_call_operand.vmem [shape: f32[32,1], index: 4, kind: input, shape index: {}]   ;;  %s796_s5 = inlined_call_operand.vmem [shape: f32[32,1], index: 5, kind: input, shape index: {}]   ;;  %s797_s6 = inlined_call_operand.<no memory space> [shape: f32[1,1], index: 6, kind: input, shape index: {}]   ;;  %s798_s7 = inlined_call_operand.hbm [shape: f32[1,256], index: 7, kind: output, shape index: {}]  }
   0x1   :  { %v43_v0 = vld [vmem:[%s791_s0 + $0x70] sm:$0xff]  ;;  %v44_v1 = vld [vmem:[%s791_s0 + $0x78] sm:$0xff]  ;;  %v41_v6 = vld [vmem:[%s791_s0 + $0x60] sm:$0xff] }
   0x2   :  { %v59_v2 = vld [vmem:[%s791_s0 + $0xf0] sm:$0xff]  ;;  %v68_v3 = vpack.c.bf16 %v44_v1, %v43_v0  ;;  %v60_v4 = vld [vmem:[%s791_s0 + $0xf8] sm:$0xff]  ;;  %v42_v7 = vld [vmem:[%s791_s0 + $0x68] sm:$0xff] }
   0x3   :  { %v76_v5 = vpack.c.bf16 %v60_v4, %v59_v2  ;;  %v57_v9 = vld [vmem:[%s791_s0 + $0xe0] sm:$0xff]  ;;  %v58_v10 = vld [vmem:[%s791_s0 + $0xe8] sm:$0xff]  ;;  %v67_v12 = vpack.c.bf16 %v42_v7, %v41_v6 }
   0x4   :  { %v188_v8 = vsel %vm153_vm0, %v68_v3, 0  ;;  %v75_v13 = vpack.c.bf16 %v58_v10, %v57_v9 }
   0x5   :  { %214 = vmatpush.bf16.xpose.msra.mxu0 %v188_v8  ;;  %v212_v11 = vsel %vm153_vm0, %v76_v5, 0  ;;  %510 = vmatpush.bf16.xpose.msra.mxu2 %v188_v8 }
   0x6   :  { %243 = vmatpush.bf16.xpose.msra.mxu1 %v212_v11  ;;  %518 = vmatpush.bf16.xpose.msra.mxu3 %v212_v11 }
   0x7   :  { %13 = vsyncpa [#allocation4], 0  ;;  %v185_v14 = vsel %vm153_vm0, %v67_v12, 0  ;;  %v209_v15 = vsel %vm153_vm0, %v75_v13, 0  ;;  %v39_v16 = vld [vmem:[%s791_s0 + $0x50] sm:$0xff]  ;;  %v40_v17 = vld [vmem:[%s791_s0 + $0x58] sm:$0xff] }
   0x8   :  { %v55_v18 = vld [vmem:[%s791_s0 + $0xd0] sm:$0xff]  ;;  %v56_v19 = vld [vmem:[%s791_s0 + $0xd8] sm:$0xff]  ;;  %v66_v20 = vpack.c.bf16 %v40_v17, %v39_v16  ;;  %v37_v24 = vld [vmem:[%s791_s0 + $0x40] sm:$0xff]  ;;  %v557_v39 = vmov 0   ;;  %vm334_vm1 = vcmask 523264   ;;  %s558_s12 = smov [#allocation3]  }
   0x9   :  { %v74_v21 = vpack.c.bf16 %v56_v19, %v55_v18  ;;  %v38_v25 = vld [vmem:[%s791_s0 + $0x48] sm:$0xff]  ;;  %v53_v26 = vld [vmem:[%s791_s0 + $0xc0] sm:$0xff]  ;;  %v35_v32 = vld [vmem:[%s791_s0 + $0x30] sm:$0xff]  ;;  %528 = vset.pattern.permute.xlu0 %v557_v39  ;;  %529 = vset.pattern.permute.xlu1 %v557_v39  ;;  %s457_s13 = sshll.u32 %s558_s12, 4  ;;  %s459_s16 = sshll.u32 %s798_s7, 4  ;;  %vm444_vm2 = vcmask 1040384   ;;  %s458_s13 = int_to_ptr.vmem [resolvable:$true] %s457_s13  ;;  %s460_s16 = int_to_ptr.hbm [resolvable:$true] %s459_s16 }
   0xa   :  { %v182_v22 = vsel %vm153_vm0, %v66_v20, 0  ;;  %v54_v27 = vld [vmem:[%s791_s0 + $0xc8] sm:$0xff]  ;;  %v65_v28 = vpack.c.bf16 %v38_v25, %v37_v24  ;;  %v36_v33 = vld [vmem:[%s791_s0 + $0x38] sm:$0xff]  ;;  %v51_v34 = vld [vmem:[%s791_s0 + $0xb0] sm:$0xff]  ;;  %530 = vset.pattern.permute.xlu2 %v557_v39 }
   0xb   :  { %v206_v23 = vsel %vm153_vm0, %v74_v21, 0  ;;  %v73_v29 = vpack.c.bf16 %v54_v27, %v53_v26  ;;  %v52_v35 = vld [vmem:[%s791_s0 + $0xb8] sm:$0xff]  ;;  %v64_v36 = vpack.c.bf16 %v36_v33, %v35_v32  ;;  %v91_v37 = vld [vmem:[%s793_s2 + $0x30] sm:$0xff]  ;;  %v33_v42 = vld [vmem:[%s791_s0 + $0x20] sm:$0xff] }
   0xc   :  { %v179_v30 = vsel %vm153_vm0, %v65_v28, 0  ;;  %v72_v38 = vpack.c.bf16 %v52_v35, %v51_v34  ;;  %125 = vperm.xlu0 %528, %v91_v37   ;;  %v34_v43 = vld [vmem:[%s791_s0 + $0x28] sm:$0xff]  ;;  %v49_v44 = vld [vmem:[%s791_s0 + $0xa0] sm:$0xff]  ;;  %v92_v46 = vld [vmem:[%s793_s2 + $0x38] sm:$0xff] }
   0xd   :  { %215 = vmatpush.bf16.xpose.msra.mxu0 %v185_v14  ;;  %511 = vmatpush.bf16.xpose.msra.mxu2 %v185_v14  ;;  %v203_v31 = vsel %vm153_vm0, %v73_v29, 0  ;;  %v176_v40 = vsel %vm153_vm0, %v64_v36, 0  ;;  %v50_v45 = vld [vmem:[%s791_s0 + $0xa8] sm:$0xff]  ;;  %v89_v47 = vld [vmem:[%s793_s2 + $0x20] sm:$0xff]  ;;  %v63_v48 = vpack.c.bf16 %v34_v43, %v33_v42  ;;  %v31_v52 = vld [vmem:[%s791_s0 + $0x10] sm:$0xff] }
   0xe   :  { %244 = vmatpush.bf16.xpose.msra.mxu1 %v209_v15  ;;  %519 = vmatpush.bf16.xpose.msra.mxu3 %v209_v15  ;;  %v200_v41 = vsel %vm153_vm0, %v72_v38, 0  ;;  %v71_v49 = vpack.c.bf16 %v50_v45, %v49_v44  ;;  %v32_v53 = vld [vmem:[%s791_s0 + $0x18] sm:$0xff]  ;;  %v47_v54 = vld [vmem:[%s791_s0 + $0x90] sm:$0xff]  ;;  %v90_v56 = vld [vmem:[%s793_s2 + $0x28] sm:$0xff] }
   0xf   :  { %115 = vperm.xlu1 %529, %v89_v47   ;;  %v173_v50 = vsel %vm153_vm0, %v63_v48, 0  ;;  %v48_v55 = vld [vmem:[%s791_s0 + $0x98] sm:$0xff]  ;;  %v85_v57 = vld [vmem:[%s793_s2] sm:$0xff]  ;;  %v62_v58 = vpack.c.bf16 %v32_v53, %v31_v52  ;;  %v30_v63 = vld [vmem:[%s791_s0 + $0x8] sm:$0xff] }
  0x10   :  { %v197_v51 = vsel %vm153_vm0, %v71_v49, 0  ;;  %v70_v59 = vpack.c.bf16 %v48_v55, %v47_v54  ;;  %v29_v62 = vld [vmem:[%s791_s0] sm:$0xff]  ;;  %v46_v1 = vld [vmem:[%s791_s0 + $0x88] sm:$0xff]  ;;  %v507_v10 = vld [vmem:[%s792_s1 + $0x18] sm:$0xff] }
  0x11   :  { %v170_v60 = vsel %vm153_vm0, %v62_v58, 0  ;;  %v45_v0 = vld [vmem:[%s791_s0 + $0x80] sm:$0xff]  ;;  %v86_v2 = vld [vmem:[%s793_s2 + $0x8] sm:$0xff]  ;;  %v61_v4 = vpack.c.bf16 %v30_v63, %v29_v62  ;;  %v302_v11 = vld [vmem:[%s795_s4 + $0x10] sm:$0xff] }
  0x12   :  { %v194_v61 = vsel %vm153_vm0, %v70_v59, 0  ;;  %v301_v3 = vld [vmem:[%s795_s4 + $0x8] sm:$0xff]  ;;  %v69_v5 = vpack.c.bf16 %v46_v1, %v45_v0  ;;  %v387_v8 = vld [vmem:[%s796_s5] sm:$0xff]  ;;  %v87_v12 = vld [vmem:[%s793_s2 + $0x10] sm:$0xff] }
  0x13   :  { %v167_v6 = vsel %vm153_vm0, %v61_v4, 0  ;;  %v504_v9 = vld [vmem:[%s792_s1] sm:$0xff]  ;;  %v390_v13 = vld [vmem:[%s796_s5 + $0x18] sm:$0xff]  ;;  %105 = vperm.xlu2 %530, %v87_v12   ;;  %v388_v14 = vld [vmem:[%s796_s5 + $0x8] sm:$0xff] }
  0x14   :  { %130 = vperm.xlu0 %528, %v92_v46   ;;  %v191_v7 = vsel %vm153_vm0, %v69_v5, 0  ;;  %v88_v15 = vld [vmem:[%s793_s2 + $0x18] sm:$0xff]  ;;  %v505_v16 = vld [vmem:[%s792_s1 + $0x8] sm:$0xff]  ;;  %v300_v17 = vld [vmem:[%s795_s4] sm:$0xff] }
  0x15   :  { %216 = vmatpush.bf16.xpose.msra.mxu0 %v182_v22  ;;  %512 = vmatpush.bf16.xpose.msra.mxu2 %v182_v22  ;;  %v303_v18 = vld [vmem:[%s795_s4 + $0x18] sm:$0xff]  ;;  %v506_v19 = vld [vmem:[%s792_s1 + $0x10] sm:$0xff] }
  0x16   :  { %245 = vmatpush.bf16.xpose.msra.mxu1 %v206_v23  ;;  %520 = vmatpush.bf16.xpose.msra.mxu3 %v206_v23  ;;  %v389_v20 = vld [vmem:[%s796_s5 + $0x10] sm:$0xff] }
  0x17   :  { %120 = vperm.xlu1 %529, %v90_v56  }
  0x1b   :  { %110 = vperm.xlu2 %530, %v88_v15  }
  0x1c   :  { %95 = vperm.xlu0 %528, %v85_v57  }
  0x1d   :  { %217 = vmatpush.bf16.xpose.msra.mxu0 %v179_v30  ;;  %513 = vmatpush.bf16.xpose.msra.mxu2 %v179_v30 }
  0x1e   :  { %246 = vmatpush.bf16.xpose.msra.mxu1 %v203_v31  ;;  %521 = vmatpush.bf16.xpose.msra.mxu3 %v203_v31 }
  0x1f   :  { %100 = vperm.xlu1 %529, %v86_v2  }
  0x23   :  { %306 = vperm.xlu2 %530, %v300_v17  }
  0x24   :  { %311 = vperm.xlu0 %528, %v301_v3  }
  0x25   :  { %218 = vmatpush.bf16.xpose.msra.mxu0 %v176_v40  ;;  %514 = vmatpush.bf16.xpose.msra.mxu2 %v176_v40 }
  0x26   :  { %247 = vmatpush.bf16.xpose.msra.mxu1 %v200_v41  ;;  %522 = vmatpush.bf16.xpose.msra.mxu3 %v200_v41 }
  0x27   :  { %316 = vperm.xlu1 %529, %v302_v11  }
  0x2b   :  { %321 = vperm.xlu2 %530, %v303_v18  }
  0x2c   :  { %393 = vperm.xlu0 %528, %v387_v8  }
  0x2d   :  { %219 = vmatpush.bf16.xpose.msra.mxu0 %v173_v50  ;;  %515 = vmatpush.bf16.xpose.msra.mxu2 %v173_v50 }
  0x2e   :  { %248 = vmatpush.bf16.xpose.msra.mxu1 %v197_v51  ;;  %523 = vmatpush.bf16.xpose.msra.mxu3 %v197_v51 }
  0x2f   :  { %398 = vperm.xlu1 %529, %v388_v14  }
  0x33   :  { %403 = vperm.xlu2 %530, %v389_v20  }
  0x34   :  { %408 = vperm.xlu0 %528, %v390_v13  }
  0x35   :  { %220 = vmatpush.bf16.xpose.msra.mxu0 %v170_v60  ;;  %516 = vmatpush.bf16.xpose.msra.mxu2 %v170_v60 }
  0x36   :  { %249 = vmatpush.bf16.xpose.msra.mxu1 %v194_v61  ;;  %524 = vmatpush.bf16.xpose.msra.mxu3 %v194_v61 }
  0x3d   :  { %221 = vmatpush.bf16.xpose.msra.mxu0 %v167_v6  ;;  %517 = vmatpush.bf16.xpose.msra.mxu2 %v167_v6 }
  0x3e   :  { %250 = vmatpush.bf16.xpose.msra.mxu1 %v191_v7  ;;  %525 = vmatpush.bf16.xpose.msra.mxu3 %v191_v7 }
  0x44   :  { %484 = vmatmul.msk.bf16.vlgmr.msra.gmra.mxu0 %vm153_vm0, %v504_v9  ;;  %487 = vmatmul.msk.bf16.vlgmr.msra.gmra.mxu2 %vm153_vm0, %v507_v10 }
  0x45   :  { %488 = vmatmul.msk.bf16.vlgmr.msra.gmra.mxu1 %vm153_vm0, %v504_v9  ;;  %491 = vmatmul.msk.bf16.vlgmr.msra.gmra.mxu3 %vm153_vm0, %v507_v10 }
  0x54   :  { %485 = vmatmul.msk.bf16.gmra.mxu0 %vm153_vm0, %v505_v16 }
  0x55   :  { %489 = vmatmul.msk.bf16.gmra.mxu1 %vm153_vm0, %v505_v16 }
  0x64   :  { %486 = vmatmul.msk.bf16.gmra.mxu0 %vm153_vm0, %v506_v19 }
  0x65   :  { %490 = vmatmul.msk.bf16.gmra.mxu1 %vm153_vm0, %v506_v19 }
  0x6d   :  { %v106_v46 = vpop.permute.xlu2 %105 }
  0x75   :  { %v111_v51 = vpop.permute.xlu2 %110 }
  0x7e   :  { %v126_v23 = vpop.permute.xlu0 %125 }
  0x81   :  { %v116_v43 = vpop.permute.xlu1 %115 }
  0x86   :  { %v131_v30 = vpop.permute.xlu0 %130 }
  0x89   :  { %v121_v47 = vpop.permute.xlu1 %120 }
  0x8e   :  { %v96_v2 = vpop.permute.xlu0 %95 }
  0x91   :  { %v101_v57 = vpop.permute.xlu1 %100 }
  0xc1   :  { %v223_v21 = vpop.f32.mrf.mxu0 }
  0xc2   :  { %v252_v22 = vpop.f32.mrf.mxu1  ;;  %v224_v9 = vadd.f32 %v223_v21, %v96_v2  ;;  %v509_v21 = vld [vmem:[%s794_s3 + $0x8] sm:$0xff] }
  0xc3   :  { %v253_v11 = vadd.f32 %v252_v22, %v96_v2 }
  0xc4   :  { %v272_v17 = vmax.f32 %v224_v9, 0.0 }
  0xc5   :  { %v273_v18 = vmax.f32 %v253_v11, 0.0 }
  0xc7   :  { %v238_v24 = vpop.f32.mrf.mxu2 }
  0xc8   :  { %v267_v25 = vpop.f32.mrf.mxu3  ;;  %v239_v28 = vadd.f32 %v238_v24, %v126_v23 }
  0xc9   :  { %v225_v26 = vpop.f32.mrf.mxu0  ;;  %v268_v29 = vadd.f32 %v267_v25, %v126_v23  ;;  %v508_v23 = vld [vmem:[%s794_s3] sm:$0xff]  ;;  %v307_v25 = vpop.permute.xlu2 %306 }
  0xca   :  { %v254_v27 = vpop.f32.mrf.mxu1  ;;  %v284_v32 = vmax.f32 %v239_v28, 0.0  ;;  %v226_v3 = vadd.f32 %v225_v26, %v101_v57  ;;  %v312_v26 = vpop.permute.xlu0 %311 }
  0xcb   :  { %v285_v36 = vmax.f32 %v268_v29, 0.0  ;;  %v255_v6 = vadd.f32 %v254_v27, %v101_v57  ;;  %v317_v29 = vpop.permute.xlu1 %316 }
  0xcc   :  { %v274_v13 = vmax.f32 %v226_v3, 0.0 }
  0xcd   :  { %v275_v15 = vmax.f32 %v255_v6, 0.0 }
  0xce   :  { %v292_v19 = vpack.c.bf16 %v274_v13, %v272_v17 }
  0xcf   :  { %v240_v31 = vpop.f32.mrf.mxu2  ;;  %v293_v20 = vpack.c.bf16 %v275_v15, %v273_v18  ;;  %v438_v15 = vstv %s797_s6  ;;  %v447_v18 = vlaneseq }
  0xd0   :  { %v241_v33 = vadd.f32 %v240_v31, %v131_v30  ;;  %v269_v34 = vpop.f32.mrf.mxu3 }
  0xd1   :  { %v228_v35 = vpop.f32.mrf.mxu0  ;;  %v270_v37 = vadd.f32 %v269_v34, %v131_v30  ;;  %v322_v30 = vpop.permute.xlu2 %321  ;;  %vm449_vm3 = vcmp.lt.s32.totalorder %v447_v18, 256 }
  0xd2   :  { %v257_v38 = vpop.f32.mrf.mxu1  ;;  %v286_v39 = vmax.f32 %v241_v33, 0.0  ;;  %v229_v60 = vadd.f32 %v228_v35, %v106_v46 }
  0xd3   :  { %v287_v40 = vmax.f32 %v270_v37, 0.0  ;;  %v258_v63 = vadd.f32 %v257_v38, %v106_v46  ;;  %v394_v37 = vpop.permute.xlu0 %393 }
  0xd4   :  { %v298_v41 = vpack.c.bf16 %v286_v39, %v284_v32  ;;  %v276_v10 = vmax.f32 %v229_v60, 0.0 }
  0xd5   :  { %v299_v42 = vpack.c.bf16 %v287_v40, %v285_v36  ;;  %v277_v12 = vmax.f32 %v258_v63, 0.0 }
  0xd6   :  { %345 = vmatpush.bf16.msrb.mxu2 %v298_v41 }
  0xd7   :  { %364 = vmatpush.bf16.msrb.mxu3 %v299_v42 }
  0xd9   :  { %v230_v44 = vpop.f32.mrf.mxu0 }
  0xda   :  { %v259_v45 = vpop.f32.mrf.mxu1  ;;  %v231_v54 = vadd.f32 %v230_v44, %v111_v51  ;;  %v399_v44 = vpop.permute.xlu1 %398 }
  0xdb   :  { %v260_v58 = vadd.f32 %v259_v45, %v111_v51  ;;  %v409_v60 = vpop.permute.xlu0 %408 }
  0xdc   :  { %v278_v4 = vmax.f32 %v231_v54, 0.0 }
  0xdd   :  { %v279_v7 = vmax.f32 %v260_v58, 0.0 }
  0xde   :  { %v294_v14 = vpack.c.bf16 %v278_v4, %v276_v10 }
  0xdf   :  { %v295_v16 = vpack.c.bf16 %v279_v7, %v277_v12 }
  0xe1   :  { %v233_v48 = vpop.f32.mrf.mxu0 }
  0xe2   :  { %v262_v49 = vpop.f32.mrf.mxu1  ;;  %v234_v50 = vadd.f32 %v233_v48, %v116_v43  ;;  %v404_v48 = vpop.permute.xlu2 %403 }
  0xe3   :  { %v263_v52 = vadd.f32 %v262_v49, %v116_v43 }
  0xe4   :  { %v280_v61 = vmax.f32 %v234_v50, 0.0 }
  0xe5   :  { %v281_v0 = vmax.f32 %v263_v52, 0.0 }
  0xe9   :  { %v235_v53 = vpop.f32.mrf.mxu0 }
  0xea   :  { %v236_v55 = vadd.f32 %v235_v53, %v121_v47  ;;  %v264_v56 = vpop.f32.mrf.mxu1 }
  0xeb   :  { %v265_v59 = vadd.f32 %v264_v56, %v121_v47 }
  0xec   :  { %v282_v62 = vmax.f32 %v236_v55, 0.0 }
  0xed   :  { %v283_v1 = vmax.f32 %v265_v59, 0.0 }
  0xee   :  { %v296_v5 = vpack.c.bf16 %v282_v62, %v280_v61 }
  0xef   :  { %v297_v8 = vpack.c.bf16 %v283_v1, %v281_v0 }
  0xf0   :  { %346 = vmatpush.bf16.msrb.mxu2 %v296_v5 }
  0xf1   :  { %365 = vmatpush.bf16.msrb.mxu3 %v297_v8 }
  0xf4   :  { %347 = vmatpush.bf16.msrb.mxu2 %v294_v14 }
  0xf5   :  { %366 = vmatpush.bf16.msrb.mxu3 %v295_v16 }
  0xf8   :  { %348 = vmatpush.bf16.msrb.mxu2 %v292_v19 }
  0xf9   :  { %367 = vmatpush.bf16.msrb.mxu3 %v293_v20 }
  0xfb   :  { %500 = vmatmul.msk.bf16.vlgmr.msrb.gmra.mxu2 %vm334_vm1, %v508_v23 }
  0xfc   :  { %502 = vmatmul.msk.bf16.vlgmr.msrb.gmra.mxu3 %vm334_vm1, %v508_v23 }
 0x10b   :  { %501 = vmatmul.msk.bf16.gmra.mxu2 %vm334_vm1, %v509_v21 }
 0x10c   :  { %503 = vmatmul.msk.bf16.gmra.mxu3 %vm334_vm1, %v509_v21 }
 0x17e   :  { %v350_v22 = vpop.f32.mrf.mxu2 }
 0x17f   :  { %v369_v24 = vpop.f32.mrf.mxu3  ;;  %v351_v34 = vadd.f32 %v350_v22, %v307_v25 }
 0x180   :  { %v370_v38 = vadd.f32 %v369_v24, %v307_v25 }
 0x181   :  { %v379_v42 = vmax.f32 %v351_v34, 0.0 }
 0x182   :  { %v380_v45 = vmax.f32 %v370_v38, 0.0 }
 0x183   :  { %v411_v51 = vmul.f32 %v394_v37, %v379_v42 }
 0x184   :  { %v412_v55 = vmul.f32 %v394_v37, %v380_v45 }
 0x186   :  { %v352_v27 = vpop.f32.mrf.mxu2 }
 0x187   :  { %v371_v28 = vpop.f32.mrf.mxu3  ;;  %v353_v31 = vadd.f32 %v352_v27, %v312_v26 }
 0x188   :  { %v372_v32 = vadd.f32 %v371_v28, %v312_v26 }
 0x189   :  { %v381_v40 = vmax.f32 %v353_v31, 0.0 }
 0x18a   :  { %v382_v41 = vmax.f32 %v372_v32, 0.0 }
 0x18b   :  { %v413_v47 = vmul.f32 %v399_v44, %v381_v40 }
 0x18c   :  { %v414_v49 = vmul.f32 %v399_v44, %v382_v41 }
 0x18d   :  { %v419_v58 = vadd.f32 %v413_v47, %v411_v51 }
 0x18e   :  { %v355_v33 = vpop.f32.mrf.mxu2  ;;  %v428_v61 = vadd.f32 %v414_v49, %v412_v55 }
 0x18f   :  { %v356_v35 = vadd.f32 %v355_v33, %v317_v29  ;;  %v374_v36 = vpop.f32.mrf.mxu3 }
 0x190   :  { %v375_v39 = vadd.f32 %v374_v36, %v317_v29 }
 0x191   :  { %v383_v43 = vmax.f32 %v356_v35, 0.0 }
 0x192   :  { %v384_v46 = vmax.f32 %v375_v39, 0.0 }
 0x193   :  { %v415_v52 = vmul.f32 %v404_v48, %v383_v43 }
 0x194   :  { %v416_v56 = vmul.f32 %v404_v48, %v384_v46 }
 0x195   :  { %v420_v63 = vadd.f32 %v419_v58, %v415_v52 }
 0x196   :  { %v357_v50 = vpop.f32.mrf.mxu2  ;;  %v429_v1 = vadd.f32 %v428_v61, %v416_v56 }
 0x197   :  { %v358_v53 = vadd.f32 %v357_v50, %v322_v30  ;;  %v376_v54 = vpop.f32.mrf.mxu3 }
 0x198   :  { %v377_v57 = vadd.f32 %v376_v54, %v322_v30 }
 0x199   :  { %v385_v59 = vmax.f32 %v358_v53, 0.0 }
 0x19a   :  { %v386_v62 = vmax.f32 %v377_v57, 0.0 }
 0x19b   :  { %v417_v0 = vmul.f32 %v409_v60, %v385_v59 }
 0x19c   :  { %v418_v2 = vmul.f32 %v409_v60, %v386_v62 }
 0x19d   :  { %v421_v3 = vadd.f32 %v420_v63, %v417_v0 }
 0x19e   :  { %v430_v4 = vadd.f32 %v429_v1, %v418_v2 }
 0x19f   :  { %v422_v5 = vrot.slane %v421_v3, 4 }
 0x1a0   :  { %v431_v6 = vrot.slane %v430_v4, 4 }
 0x1a1   :  { %v423_v7 = vadd.f32 %v422_v5, %v421_v3 }
 0x1a2   :  { %v432_v8 = vadd.f32 %v431_v6, %v430_v4 }
 0x1a3   :  { %v424_v9 = vrot.slane %v423_v7, 2 }
 0x1a4   :  { %v433_v10 = vrot.slane %v432_v8, 2 }
 0x1a5   :  { %v425_v11 = vadd.f32 %v424_v9, %v423_v7 }
 0x1a6   :  { %v434_v12 = vadd.f32 %v433_v10, %v432_v8 }
 0x1a7   :  { %v426_v13 = vrot.slane %v425_v11, 1 }
 0x1a8   :  { %v435_v14 = vrot.slane %v434_v12, 1 }
 0x1a9   :  { %v427_v17 = vadd.f32 %v426_v13, %v425_v11 }
 0x1aa   :  { %v436_v16 = vadd.f32 %v435_v14, %v434_v12 }
 0x1ab   :  { %v439_v20 = vadd.f32 %v438_v15, %v427_v17 }
 0x1ac   :  { %v440_v19 = vadd.f32 %v438_v15, %v436_v16 }
 0x1ae   :  { %v443_v23 = vrot.slane %v440_v19, 7 }
 0x1b0   :  { %v445_v21 = vsel %vm444_vm2, %v439_v20, %v443_v23 }
 0x1b1   :  { %451 = vst.msk [vmem:[#allocation3] sm:$0x3] %vm449_vm3, %v445_v21 }
 0x1b2   :  { %462 = dma.vmem_to_hbm [thread:$0]  %s458_s13, 32, %s460_s16, [#allocation4]  }
 0x1b3   :  { %555 = dma.done.wait [#allocation4], 32  }
 0x1b4   :  { %556 = vsyncadd [#allocation4], 4294967264 }
 0x1b5   :  { %467 = vsyncpa [#allocation4], 1 }

</bundles_post_ra>
